<compile_context>
chip_gen: v5e
topology: v5e:2x2
jax: 0.10.0
libtpu: 0.0.40
codegen_flags: <defaults>
</compile_context>

<pallas_src>
import functools
import math

import jax
import jax.numpy as jnp
from jax import lax
from jax.experimental import pallas as pl
from jax.experimental.pallas import tpu as pltpu


# ----------------------------- Pallas kernels ------------------------------

def _linear_nt_kernel(x_ref, w_ref, b_ref, o_ref, acc_ref):
    """One (i, j, k) tile of y = x @ w.T + b, with w kept in torch (out, in) layout."""
    k = pl.program_id(2)

    @pl.when(k == 0)
    def _():
        acc_ref[...] = jnp.zeros_like(acc_ref)

    # x block: (tm, tk); w block: (tn, tk).  Contract dim 1 of both (NT matmul) — this feeds
    # the MXU directly; no transpose of the weight anywhere in the pipeline.
    acc_ref[...] += lax.dot_general(
        x_ref[...], w_ref[...],
        dimension_numbers=(((1,), (1,)), ((), ())),
        preferred_element_type=jnp.float32)

    @pl.when(k == pl.num_programs(2) - 1)
    def _():
        o_ref[...] = (acc_ref[...] + b_ref[...]).astype(o_ref.dtype)


def _attention_kernel(qkv_ref, o_ref, *, head, d_k, scale):
    """All heads of one batch row: qkv block (1, S, 3E) -> output block (1, S, E)."""
    E = head * d_k
    qkv = qkv_ref[0]                                        # (S, 3E), VMEM-resident
    outs = []
    for h in range(head):                                   # static unroll over heads
        q = qkv[:, h * d_k:(h + 1) * d_k]                   # (S, d_k)
        kk = qkv[:, E + h * d_k:E + (h + 1) * d_k]          # (S, d_k)
        v = qkv[:, 2 * E + h * d_k:2 * E + (h + 1) * d_k]   # (S, d_k)
        # scores = q @ k.T without materializing a transpose (NT dot_general on the MXU).
        scores = lax.dot_general(
            q, kk, dimension_numbers=(((1,), (1,)), ((), ())),
            preferred_element_type=jnp.float32) * scale     # (S, S)
        m = jnp.max(scores, axis=-1, keepdims=True)
        e = jnp.exp(scores - m)
        denom = jnp.sum(e, axis=-1, keepdims=True)
        p = e * pl.reciprocal(denom, approx=True)           # EUP reciprocal -> VALU slot stays free
        outs.append(jnp.dot(p, v, preferred_element_type=jnp.float32))
    # Single lane-dense (S, E) store in the final (B, S, E) layout (no HBM head-merge transpose).
    o_ref[0] = jnp.concatenate(outs, axis=-1).astype(o_ref.dtype)


# ------------------------------ JAX wrappers --------------------------------

def _pick_tile(dim, target):
    """Largest clean tile <= target; falls back to the full dim when it doesn't divide."""
    if dim <= target:
        return dim
    if dim % target == 0:
        return target
    return dim


def _pallas_linear_nt(x2d, w, b, *, tm=256, tn=256, tk=512):
    """y = x2d @ w.T + b (torch nn.Linear semantics); w stays in (out, in) layout."""
    m, k_dim = x2d.shape
    n = w.shape[0]
    tm = _pick_tile(m, tm)
    tn = _pick_tile(n, tn)
    tk = _pick_tile(k_dim, tk)
    grid = (m // tm, n // tn, k_dim // tk)
    return pl.pallas_call(
        _linear_nt_kernel,
        out_shape=jax.ShapeDtypeStruct((m, n), jnp.float32),
        grid_spec=pltpu.PrefetchScalarGridSpec(
            num_scalar_prefetch=0,
            grid=grid,
            in_specs=[
                pl.BlockSpec((tm, tk), lambda i, j, k: (i, k)),
                pl.BlockSpec((tn, tk), lambda i, j, k: (j, k)),
                pl.BlockSpec((1, tn), lambda i, j, k: (0, j)),
            ],
            out_specs=pl.BlockSpec((tm, tn), lambda i, j, k: (i, j)),
            scratch_shapes=[pltpu.VMEM((tm, tn), jnp.float32)],
        ),
        compiler_params=pltpu.CompilerParams(
            dimension_semantics=("parallel", "parallel", "arbitrary")),
    )(x2d, w, b.reshape(1, n))


def _pallas_attention(qkv, head, d_k):
    """qkv: (B, S, 3E) -> (B, S, E);  per-head softmax(q k^T / sqrt(d_k)) v."""
    B, S, threeE = qkv.shape
    E = head * d_k
    scale = 1.0 / math.sqrt(d_k)
    return pl.pallas_call(
        functools.partial(_attention_kernel, head=head, d_k=d_k, scale=scale),
        out_shape=jax.ShapeDtypeStruct((B, S, E), jnp.float32),
        grid=(B,),
        in_specs=[pl.BlockSpec((1, S, threeE), lambda b: (b, 0, 0))],
        out_specs=pl.BlockSpec((1, S, E), lambda b: (b, 0, 0)),
        compiler_params=pltpu.CompilerParams(dimension_semantics=("parallel",)),
    )(qkv)


def prepare_params(params):
    """One-time parameter prep: fuse Q/K/V weights (torch (out,in) layout) for self-attention."""
    prepared = dict(params)
    prepared["w_qkv"] = jnp.concatenate(
        [params["w_q"], params["w_k"], params["w_v"]], axis=0)        # (3E, E)
    prepared["b_qkv"] = jnp.concatenate(
        [params["b_q"], params["b_k"], params["b_v"]], axis=0)        # (3E,)
    return prepared


def multi_head_attention(query, key, value, prepared, head):
    """Reproduces MutiHeadAttention.forward(query, key, value, mask=None)."""
    B, S, E = query.shape
    d_k = E // head

    if query is key and key is value:
        # Self-attention (encoder case): one fused QKV projection — the activations stream
        # from HBM exactly once, and 3 kernel launches collapse to 1.
        qkv = _pallas_linear_nt(query.reshape(B * S, E),
                                prepared["w_qkv"], prepared["b_qkv"])   # (B*S, 3E)
        qkv = qkv.reshape(B, S, 3 * E)                                  # free reshape
    else:
        # Cross-attention fallback (distinct q/k/v): three tiled projections, then pack into
        # the (B, S, 3E) slab the attention kernel expects.
        q = _pallas_linear_nt(query.reshape(B * S, E), prepared["w_q"], prepared["b_q"])
        k = _pallas_linear_nt(key.reshape(B * S, E),   prepared["w_k"], prepared["b_k"])
        v = _pallas_linear_nt(value.reshape(B * S, E), prepared["w_v"], prepared["b_v"])
        qkv = jnp.concatenate(
            [q.reshape(B, S, E), k.reshape(B, S, E), v.reshape(B, S, E)], axis=-1)

    # All heads of one batch row handled inside a single grid step; head split/merge happens on
    # VMEM-resident data, and the output lands directly in (B, S, E) layout (no HBM transposes).
    attn = _pallas_attention(qkv, head, d_k)                            # (B, S, E)

    out = _pallas_linear_nt(attn.reshape(B * S, E), prepared["w_o"], prepared["b_o"])
    return out.reshape(B, S, E)


# ----------------------------- reference (pure JAX) -------------------------

def reference_mha(query, key, value, params, head):
    B, S, E = query.shape
    d_k = E // head

    def lin(x, w, b):
        return x @ w.T + b

    def split_heads(x):
        return jnp.transpose(x.reshape(B, S, head, d_k), (0, 2, 1, 3))

    qh = split_heads(lin(query, params["w_q"], params["b_q"]))
    kh = split_heads(lin(key,   params["w_k"], params["b_k"]))
    vh = split_heads(lin(value, params["w_v"], params["b_v"]))
    scores = jnp.einsum("bhqd,bhkd->bhqk", qh, kh) / math.sqrt(d_k)
    p = jax.nn.softmax(scores, axis=-1)
    a = jnp.einsum("bhqk,bhkd->bhqd", p, vh)
    a = jnp.transpose(a, (0, 2, 1, 3)).reshape(B, S, E)
    return lin(a, params["w_o"], params["b_o"])


# --------------------------------- main --------------------------------------

if __name__ == "__main__":
    B, S, E, HEAD = 2, 8, 32, 4

    key = jax.random.PRNGKey(0)
    keys = jax.random.split(key, 16)

    def init_linear(kw, kb, fan_in):
        bound = 1.0 / math.sqrt(fan_in)
        w = jax.random.uniform(kw, (E, E), jnp.float32, -bound, bound)   # torch (out, in) layout
        b = jax.random.uniform(kb, (E,), jnp.float32, -bound, bound)
        return w, b

    w_q, b_q = init_linear(keys[0], keys[1], E)
    w_k, b_k = init_linear(keys[2], keys[3], E)
    w_v, b_v = init_linear(keys[4], keys[5], E)
    w_o, b_o = init_linear(keys[6], keys[7], E)
    params = dict(w_q=w_q, b_q=b_q, w_k=w_k, b_k=b_k,
                  w_v=w_v, b_v=b_v, w_o=w_o, b_o=b_o)
    prepared = prepare_params(params)   # one-time QKV weight fusion (outside the forward path)

    x      = jax.random.normal(keys[8],  (B, S, E), jnp.float32)
    key_x  = jax.random.normal(keys[9],  (B, S, E), jnp.float32)
    value  = jax.random.normal(keys[10], (B, S, E), jnp.float32)

    # Self-attention path (exercises the fused QKV projection kernel).
    out_self = jax.block_until_ready(multi_head_attention(x, x, x, prepared, HEAD))
    ref_self = reference_mha(x, x, x, params, HEAD)
    assert out_self.shape == (B, S, E)
    assert jnp.allclose(out_self, ref_self, atol=5e-3, rtol=5e-3), "self-attention mismatch"

    # Cross-attention path (distinct q/k/v, matches the module's general forward signature).
    out_cross = jax.block_until_ready(multi_head_attention(x, key_x, value, prepared, HEAD))
    ref_cross = reference_mha(x, key_x, value, params, HEAD)
    assert jnp.allclose(out_cross, ref_cross, atol=5e-3, rtol=5e-3), "cross-attention mismatch"

    print("KERNEL_OK")
</pallas_src>

<mosaic_0001>
module attributes {stable_mosaic.version = 11 : i64} {
  func.func @_linear_nt_kernel(%arg0: i32, %arg1: i32, %arg2: i32, %arg3: memref<16x32xf32, #tpu.memory_space<vmem>>, %arg4: memref<96x32xf32, #tpu.memory_space<vmem>>, %arg5: memref<1x96xf32, #tpu.memory_space<vmem>>, %arg6: memref<16x96xf32, #tpu.memory_space<vmem>>, %arg7: memref<16x96xf32, #tpu.memory_space<vmem>>) attributes {dimension_semantics = [#tpu.dimension_semantics<parallel>, #tpu.dimension_semantics<parallel>, #tpu.dimension_semantics<arbitrary>], iteration_bounds = array<i64: 1, 1, 1>, scalar_prefetch = 0 : i64, scratch_operands = 1 : i64, tpu.core_type = #tpu.core_type<tc>, window_params = [{transform_indices = @transform_0, window_bounds = array<i64: 16, 32>}, {transform_indices = @transform_1, window_bounds = array<i64: 96, 32>}, {transform_indices = @transform_2, window_bounds = array<i64: 1, 96>}, {transform_indices = @transform_3, window_bounds = array<i64: 16, 96>}]} {
    %c0_i32 = arith.constant 0 : i32
    %0 = arith.cmpi eq, %arg2, %c0_i32 : i32
    %1 = arith.extui %0 : i1 to i32
    %c0_i32_0 = arith.constant 0 : i32
    %2 = arith.cmpi ne, %1, %c0_i32_0 : i32
    scf.if %2 {
      %cst_10 = arith.constant 0.000000e+00 : f32
      %12 = vector.broadcast %cst_10 : f32 to vector<16x96xf32>
      %c0_11 = arith.constant 0 : index
      %c0_12 = arith.constant 0 : index
      %13 = vector.load %arg7[%c0_11, %c0_12] : memref<16x96xf32, #tpu.memory_space<vmem>>, vector<16x96xf32>
      tpu.vector_store %arg7[%c0_11, %c0_12], %12 {strides = array<i32>} : memref<16x96xf32, #tpu.memory_space<vmem>>, vector<16x96xf32>,
    } else {
    }
    %c0 = arith.constant 0 : index
    %c0_1 = arith.constant 0 : index
    %3 = vector.load %arg7[%c0, %c0_1] : memref<16x96xf32, #tpu.memory_space<vmem>>, vector<16x96xf32>
    %c0_2 = arith.constant 0 : index
    %c0_3 = arith.constant 0 : index
    %4 = vector.load %arg3[%c0_2, %c0_3] : memref<16x32xf32, #tpu.memory_space<vmem>>, vector<16x32xf32>
    %c0_4 = arith.constant 0 : index
    %c0_5 = arith.constant 0 : index
    %5 = vector.load %arg4[%c0_4, %c0_5] : memref<96x32xf32, #tpu.memory_space<vmem>>, vector<96x32xf32>
    %cst = arith.constant dense<0.000000e+00> : vector<16x96xf32>
    %6 = tpu.matmul %4, %5, %cst {dimension_numbers = #tpu.dot_dimension_numbers<[1], [1], [0], [0], [0, 0, 1, 0], [], []>} : vector<16x32xf32>, vector<96x32xf32>, vector<16x96xf32> -> vector<16x96xf32>
    %7 = arith.addf %3, %6 : vector<16x96xf32>
    %c0_6 = arith.constant 0 : index
    %c0_7 = arith.constant 0 : index
    %8 = vector.load %arg7[%c0_6, %c0_7] : memref<16x96xf32, #tpu.memory_space<vmem>>, vector<16x96xf32>
    tpu.vector_store %arg7[%c0_6, %c0_7], %7 {strides = array<i32>} : memref<16x96xf32, #tpu.memory_space<vmem>>, vector<16x96xf32>,
    %c0_i32_8 = arith.constant 0 : i32
    %9 = arith.cmpi eq, %arg2, %c0_i32_8 : i32
    %10 = arith.extui %9 : i1 to i32
    %c0_i32_9 = arith.constant 0 : i32
    %11 = arith.cmpi ne, %10, %c0_i32_9 : i32
    scf.if %11 {
      %c0_10 = arith.constant 0 : index
      %c0_11 = arith.constant 0 : index
      %12 = vector.load %arg7[%c0_10, %c0_11] : memref<16x96xf32, #tpu.memory_space<vmem>>, vector<16x96xf32>
      %c0_12 = arith.constant 0 : index
      %c0_13 = arith.constant 0 : index
      %13 = vector.load %arg5[%c0_12, %c0_13] : memref<1x96xf32, #tpu.memory_space<vmem>>, vector<1x96xf32>
      %14 = vector.broadcast %13 : vector<1x96xf32> to vector<16x96xf32>
      %15 = arith.addf %12, %14 : vector<16x96xf32>
      %c0_14 = arith.constant 0 : index
      %c0_15 = arith.constant 0 : index
      %16 = vector.load %arg6[%c0_14, %c0_15] : memref<16x96xf32, #tpu.memory_space<vmem>>, vector<16x96xf32>
      tpu.vector_store %arg6[%c0_14, %c0_15], %15 {strides = array<i32>} : memref<16x96xf32, #tpu.memory_space<vmem>>, vector<16x96xf32>,
    } else {
    }
    return
  }
  func.func @transform_0(%arg0: i32, %arg1: i32, %arg2: i32) -> (i32, i32) {
    %c0_i32 = arith.constant 0 : i32
    return %arg0, %arg2 : i32, i32
  }
  func.func @transform_1(%arg0: i32, %arg1: i32, %arg2: i32) -> (i32, i32) {
    %c0_i32 = arith.constant 0 : i32
    return %arg1, %arg2 : i32, i32
  }
  func.func @transform_2(%arg0: i32, %arg1: i32, %arg2: i32) -> (i32, i32) {
    %c0_i32 = arith.constant 0 : i32
    %c0_i32_0 = arith.constant 0 : i32
    return %c0_i32, %arg1 : i32, i32
  }
  func.func @transform_3(%arg0: i32, %arg1: i32, %arg2: i32) -> (i32, i32) {
    %c0_i32 = arith.constant 0 : i32
    return %arg0, %arg1 : i32, i32
  }
}

</mosaic_0001>

<bundles_post_ra>
// kernel: tpu_custom_call.1
= control target key start
LH: loop header
LB: loop body
LE: loop exit
PB: predicated region body
PF: predicated region fallthrough
CT: control target
= control target key end

     0   :  { %vm38_vm0 = vcmask 261120   ;;  %s301_s0 = inlined_call_operand.vmem [shape: f32[16,32], index: 0, kind: input, shape index: {}]   ;;  %s302_s1 = inlined_call_operand.vmem [shape: f32[96,32], index: 1, kind: input, shape index: {}]   ;;  %s303_s2 = inlined_call_operand.vmem [shape: f32[1,96], index: 2, kind: input, shape index: {}]   ;;  %s304_s3 = inlined_call_operand.hbm [shape: f32[16,96], index: 3, kind: output, shape index: {}]  }
   0x1   :  { %v37_v0 = vld [vmem:[%s302_s1 + $0x58] sm:$0xff]  ;;  %v36_v1 = vld [vmem:[%s302_s1 + $0x50] sm:$0xff] }
   0x2   :  { %140 = vmatpush.xpose.msk.msra.mxu0 %vm38_vm0, %v37_v0  ;;  %154 = vmatpush.xpose.msk.msra.mxu1 %vm38_vm0, %v37_v0 }
   0x3   :  { %8 = vsyncpa [#allocation4], 0  ;;  %v35_v2 = vld [vmem:[%s302_s1 + $0x48] sm:$0xff]  ;;  %v34_v3 = vld [vmem:[%s302_s1 + $0x40] sm:$0xff]  ;;  %vm19_vm1 = vcmask 785408   ;;  %v197_v5 = vmov 0.0  }
   0x4   :  { %v33_v4 = vld [vmem:[%s302_s1 + $0x38] sm:$0xff]  ;;  %20 = vst.msk [vmem:[#allocation2] sm:$0xff] %vm19_vm1, %v197_v5  ;;  %v32_v6 = vld [vmem:[%s302_s1 + $0x30] sm:$0xff]  ;;  %v31_v7 = vld [vmem:[%s302_s1 + $0x28] sm:$0xff]  ;;  %s198_s14 = smov [#allocation3]   ;;  %s128_s17 = sshll.u32 %s304_s3, 4  ;;  %s129_s17 = int_to_ptr.hbm [resolvable:$true] %s128_s17 }
   0x5   :  { %21 = vst.msk [vmem:[#allocation2 + $0x8] sm:$0xff] %vm19_vm1, %v197_v5  ;;  %v30_v8 = vld [vmem:[%s302_s1 + $0x20] sm:$0xff]  ;;  %v29_v9 = vld [vmem:[%s302_s1 + $0x18] sm:$0xff]  ;;  %v28_v10 = vld [vmem:[%s302_s1 + $0x10] sm:$0xff]  ;;  %s199_s18 = smov 128   ;;  %s200_s19 = smov 8  }
   0x6   :  { %141 = vmatpush.xpose.msk.msra.mxu0 %vm38_vm0, %v36_v1  ;;  %155 = vmatpush.xpose.msk.msra.mxu1 %vm38_vm0, %v36_v1  ;;  %v27_v11 = vld [vmem:[%s302_s1 + $0x8] sm:$0xff]  ;;  %v26_v12 = vld [vmem:[%s302_s1] sm:$0xff] }
   0x7   :  { %v24_v13 = vld [vmem:[%s301_s0] sm:$0xff]  ;;  %v25_v14 = vld [vmem:[%s301_s0 + $0x8] sm:$0xff]  ;;  %s126_s0 = sshll.u32 %s198_s14, 4  ;;  %s127_s0 = int_to_ptr.vmem [resolvable:$true] %s126_s0 }
   0x8   :  { %v170_v21 = vld [vmem:[%s303_s2] ss:$0 sm:$0xff] }
   0xa   :  { %142 = vmatpush.xpose.msk.msra.mxu0 %vm38_vm0, %v35_v2  ;;  %156 = vmatpush.xpose.msk.msra.mxu1 %vm38_vm0, %v35_v2 }
   0xb   :  { %v22_v15 = vld [vmem:[#allocation2] sm:$0xff] }
   0xc   :  { %v23_v16 = vld [vmem:[#allocation2 + $0x8] sm:$0xff] }
   0xe   :  { %143 = vmatpush.xpose.msk.msra.mxu0 %vm38_vm0, %v34_v3  ;;  %157 = vmatpush.xpose.msk.msra.mxu1 %vm38_vm0, %v34_v3 }
  0x12   :  { %144 = vmatpush.xpose.msk.msra.mxu0 %vm38_vm0, %v33_v4  ;;  %158 = vmatpush.xpose.msk.msra.mxu1 %vm38_vm0, %v33_v4 }
  0x16   :  { %145 = vmatpush.xpose.msk.msra.mxu0 %vm38_vm0, %v32_v6  ;;  %159 = vmatpush.xpose.msk.msra.mxu1 %vm38_vm0, %v32_v6 }
  0x1a   :  { %146 = vmatpush.xpose.msk.msra.mxu0 %vm38_vm0, %v31_v7  ;;  %160 = vmatpush.xpose.msk.msra.mxu1 %vm38_vm0, %v31_v7 }
  0x1e   :  { %147 = vmatpush.xpose.msk.msra.mxu0 %vm38_vm0, %v30_v8  ;;  %161 = vmatpush.xpose.msk.msra.mxu1 %vm38_vm0, %v30_v8 }
  0x22   :  { %148 = vmatpush.xpose.msk.msra.mxu0 %vm38_vm0, %v29_v9  ;;  %162 = vmatpush.xpose.msk.msra.mxu1 %vm38_vm0, %v29_v9 }
  0x26   :  { %149 = vmatpush.xpose.msk.msra.mxu0 %vm38_vm0, %v28_v10  ;;  %163 = vmatpush.xpose.msk.msra.mxu1 %vm38_vm0, %v28_v10 }
  0x2a   :  { %150 = vmatpush.xpose.msk.msra.mxu0 %vm38_vm0, %v27_v11  ;;  %164 = vmatpush.xpose.msk.msra.mxu1 %vm38_vm0, %v27_v11 }
  0x2e   :  { %151 = vmatpush.xpose.msk.msra.mxu0 %vm38_vm0, %v26_v12  ;;  %165 = vmatpush.xpose.msk.msra.mxu1 %vm38_vm0, %v26_v12 }
  0x31   :  { %152 = vmatmul.msk.f32.vlgmr.msra.gmra.mxu0 %vm38_vm0, %v24_v13  ;;  %153 = vmatmul.msk.f32.vlgmr.msra.gmra.mxu1 %vm38_vm0, %v25_v14 }
  0xae   :  { %v98_v17 = vpop.f32.mrf.mxu0  ;;  %v101_v18 = vpop.f32.mrf.mxu1 }
  0xaf   :  { %v104_v19 = vadd.f32 %v98_v17, %v22_v15  ;;  %v105_v20 = vadd.f32 %v101_v18, %v23_v16 }
  0xb1   :  { %107 = vst.msk [vmem:[#allocation2] sm:$0xff] %vm19_vm1, %v104_v19 }
  0xb2   :  { %108 = vst.msk [vmem:[#allocation2 + $0x8] sm:$0xff] %vm19_vm1, %v105_v20 }
  0xb8   :  { %v112_v22 = vld [vmem:[#allocation2] sm:$0xff] }
  0xb9   :  { %v113_v23 = vld [vmem:[#allocation2 + $0x8] sm:$0xff]  ;;  %v118_v24 = vadd.f32 %v170_v21, %v112_v22 }
  0xba   :  { %v119_v25 = vadd.f32 %v170_v21, %v113_v23 }
  0xbb   :  { %120 = vst.msk [vmem:[#allocation3] sm:$0xff] %vm19_vm1, %v118_v24 }
  0xbc   :  { %121 = vst.msk [vmem:[#allocation3 + $0x8] sm:$0xff] %vm19_vm1, %v119_v25 }
  0xbd   :  { %134 = dma.vmem_to_hbm [thread:$0]  %s127_s0, 256, %s129_s17, [#allocation4], %s199_s18, %s199_s18, %s200_s19  }
  0xbe   :  { %195 = dma.done.wait [#allocation4], 256  }
  0xbf   :  { %196 = vsyncadd [#allocation4], 4294967040 }
  0xc0   :  { %139 = vsyncpa [#allocation4], 1 }

</bundles_post_ra>
